<compile_context>
chip_gen: v7x
topology: tpu7x:2x2x1
jax: 0.10.0
libtpu: 0.0.40
codegen_flags: <defaults>
</compile_context>

<pallas_src>
import jax
import jax.numpy as jnp
from jax.experimental import pallas as pl
from jax.experimental.pallas import tpu as pltpu

DIM = 50            # playlist embedding dimension
NUM_CLASSES = 102   # context classes
MAX_TILE_ROWS = 2048
MIN_TILE_ROWS = 512


def _round_up(n, m):
    return ((n + m - 1) // m) * m


def _choose_tile(batch):
    """Pick the batch tile size.

    - Small batches: one block covering the full batch (block dim == array dim
      is always layout-legal, even if not a multiple of 8).
    - Larger batches: aim for >=4 grid steps (dual-TC sharding on v7x), clamp
      to [MIN_TILE_ROWS, MAX_TILE_ROWS], round to a sublane multiple of 8.
      Ragged last tiles are handled by Pallas (OOB writes are dropped).
    """
    if batch <= MIN_TILE_ROWS:
        return batch
    tb = pl.cdiv(batch, 4)
    tb = max(MIN_TILE_ROWS, min(MAX_TILE_ROWS, tb))
    return _round_up(tb, 8)


def _linear_relu_kernel(x_ref, w_ref, b_ref, o_ref):
    # x_ref: [tb, DIM] f32 (streamed per grid step)
    # w_ref: [DIM, NUM_CLASSES] f32 (VMEM-resident, constant index_map)
    # b_ref: [1, NUM_CLASSES] f32   (VMEM-resident, constant index_map)
    # o_ref: [tb, NUM_CLASSES] f32
    logits = jnp.dot(x_ref[...], w_ref[...], preferred_element_type=jnp.float32)
    o_ref[...] = jnp.maximum(logits + b_ref[...], 0.0)  # bias broadcast + ReLU


@jax.jit
def categorical_classification(x, w, b):
    """relu(x @ W + b): x [B, DIM] f32, W [DIM, NUM_CLASSES], b [NUM_CLASSES].

    Returns [B, NUM_CLASSES] f32 (exactly the PyTorch module's forward).
    """
    batch, dim = x.shape
    num_classes = w.shape[1]
    b2 = jnp.reshape(b, (1, num_classes)).astype(jnp.float32)

    tb = _choose_tile(batch)
    grid = (pl.cdiv(batch, tb),)

    cost = pl.CostEstimate(
        flops=2 * batch * dim * num_classes,
        transcendentals=0,
        bytes_accessed=4 * (batch * dim            # read x
                            + dim * num_classes    # read W
                            + num_classes          # read b
                            + batch * num_classes  # write out
                            ),
    )

    return pl.pallas_call(
        _linear_relu_kernel,
        out_shape=jax.ShapeDtypeStruct((batch, num_classes), jnp.float32),
        grid_spec=pltpu.PrefetchScalarGridSpec(
            num_scalar_prefetch=0,
            grid=grid,
            in_specs=[
                pl.BlockSpec((tb, dim), lambda i: (i, 0)),            # x: streamed
                pl.BlockSpec((dim, num_classes), lambda i: (0, 0)),   # W: resident
                pl.BlockSpec((1, num_classes), lambda i: (0, 0)),     # b: resident
            ],
            out_specs=pl.BlockSpec((tb, num_classes), lambda i: (i, 0)),
        ),
        compiler_params=pltpu.CompilerParams(
            dimension_semantics=("parallel",),  # shard batch grid across TCs (v7x)
        ),
        cost_estimate=cost,
    )(x, w, b2)


if __name__ == "__main__":
    key = jax.random.PRNGKey(0)
    k_x, k_w, k_b = jax.random.split(key, 3)

    batch = 8
    # Deterministic init mimicking torch.nn.Linear's U(-1/sqrt(D), 1/sqrt(D)).
    bound = 1.0 / (DIM ** 0.5)
    w = jax.random.uniform(k_w, (DIM, NUM_CLASSES), jnp.float32, -bound, bound)
    b = jax.random.uniform(k_b, (NUM_CLASSES,), jnp.float32, -bound, bound)
    x = jax.random.normal(k_x, (batch, DIM), jnp.float32)

    out = categorical_classification(x, w, b)
    jax.block_until_ready(out)
    assert out.shape == (batch, NUM_CLASSES)
    assert out.dtype == jnp.float32

    ref = jnp.maximum(x @ w + b, 0.0)
    assert jnp.allclose(out, ref, atol=1e-2, rtol=1e-2)
    assert bool(jnp.all(out >= 0.0))

    print("KERNEL_OK")
</pallas_src>

<mosaic_0001>
module attributes {stable_mosaic.version = 11 : i64} {
  func.func @_linear_relu_kernel(%arg0: i32, %arg1: memref<8x50xf32, #tpu.memory_space<vmem>>, %arg2: memref<50x102xf32, #tpu.memory_space<vmem>>, %arg3: memref<1x102xf32, #tpu.memory_space<vmem>>, %arg4: memref<8x102xf32, #tpu.memory_space<vmem>>) attributes {dimension_semantics = [#tpu.dimension_semantics<parallel>], iteration_bounds = array<i64: 1>, scalar_prefetch = 0 : i64, scratch_operands = 0 : i64, tpu.core_type = #tpu.core_type<tc>, window_params = [{transform_indices = @transform_0, window_bounds = array<i64: 8, 50>}, {pipeline_mode = #tpu.pipeline_mode<synchronous>, transform_indices = @transform_1, window_bounds = array<i64: 50, 102>}, {pipeline_mode = #tpu.pipeline_mode<synchronous>, transform_indices = @transform_2, window_bounds = array<i64: 1, 102>}, {transform_indices = @transform_3, window_bounds = array<i64: 8, 102>}]} {
    %c0 = arith.constant 0 : index
    %c0_0 = arith.constant 0 : index
    %0 = vector.load %arg1[%c0, %c0_0] : memref<8x50xf32, #tpu.memory_space<vmem>>, vector<8x50xf32>
    %c0_1 = arith.constant 0 : index
    %c0_2 = arith.constant 0 : index
    %1 = vector.load %arg2[%c0_1, %c0_2] : memref<50x102xf32, #tpu.memory_space<vmem>>, vector<50x102xf32>
    %cst = arith.constant dense<0.000000e+00> : vector<8x102xf32>
    %2 = tpu.matmul %0, %1, %cst {dimension_numbers = #tpu.dot_dimension_numbers<[1], [0], [0], [1], [0, 0, 1, 1], [], []>} : vector<8x50xf32>, vector<50x102xf32>, vector<8x102xf32> -> vector<8x102xf32>
    %c0_3 = arith.constant 0 : index
    %c0_4 = arith.constant 0 : index
    %3 = vector.load %arg3[%c0_3, %c0_4] : memref<1x102xf32, #tpu.memory_space<vmem>>, vector<1x102xf32>
    %4 = vector.broadcast %3 : vector<1x102xf32> to vector<8x102xf32>
    %5 = arith.addf %2, %4 : vector<8x102xf32>
    %cst_5 = arith.constant 0.000000e+00 : f32
    %6 = vector.broadcast %cst_5 : f32 to vector<8x102xf32>
    %7 = arith.maximumf %5, %6 : vector<8x102xf32>
    %c0_6 = arith.constant 0 : index
    %c0_7 = arith.constant 0 : index
    %8 = vector.load %arg4[%c0_6, %c0_7] : memref<8x102xf32, #tpu.memory_space<vmem>>, vector<8x102xf32>
    tpu.vector_store %arg4[%c0_6, %c0_7], %7 {strides = array<i32>} : memref<8x102xf32, #tpu.memory_space<vmem>>, vector<8x102xf32>,
    return
  }
  func.func @transform_0(%arg0: i32) -> (i32, i32) {
    %c0_i32 = arith.constant 0 : i32
    %c0_i32_0 = arith.constant 0 : i32
    return %arg0, %c0_i32 : i32, i32
  }
  func.func @transform_1(%arg0: i32) -> (i32, i32) {
    %c0_i32 = arith.constant 0 : i32
    %c0_i32_0 = arith.constant 0 : i32
    %c0_i32_1 = arith.constant 0 : i32
    return %c0_i32, %c0_i32_0 : i32, i32
  }
  func.func @transform_2(%arg0: i32) -> (i32, i32) {
    %c0_i32 = arith.constant 0 : i32
    %c0_i32_0 = arith.constant 0 : i32
    %c0_i32_1 = arith.constant 0 : i32
    return %c0_i32, %c0_i32_0 : i32, i32
  }
  func.func @transform_3(%arg0: i32) -> (i32, i32) {
    %c0_i32 = arith.constant 0 : i32
    %c0_i32_0 = arith.constant 0 : i32
    return %arg0, %c0_i32 : i32, i32
  }
}

</mosaic_0001>

<bundles_post_ra>
// kernel: categorical_classification.1
= control target key start
LH: loop header
LB: loop body
LE: loop exit
PB: predicated region body
PF: predicated region fallthrough
CT: control target
= control target key end

     0   :  { %8 = vsyncpa [#allocation3], 0  ;;  %s344_s0 = inlined_call_operand.hbm [shape: f32[8,50], index: 0, kind: input, shape index: {}]   ;;  %s345_s1 = inlined_call_operand.hbm [shape: f32[50,102], index: 1, kind: input, shape index: {}]   ;;  %s346_s2 = inlined_call_operand.vmem [shape: f32[1,102], index: 2, kind: input, shape index: {}]   ;;  %s347_s3 = inlined_call_operand.hbm [shape: f32[8,102], index: 3, kind: output, shape index: {}]  }
   0x1   :  { %9 = vsyncpa [#allocation6], 0 }
   0x2   :  { %10 = vsyncpa [#allocation4], 0  ;;  %s270_s12 = smov [#allocation2]   ;;  %s271_s14 = smov [#allocation5]  }
   0x3   :  { %s17_s13 = sshll.u32 %s270_s12, 4  ;;  %s26_s15 = sshll.u32 %s271_s14, 4  ;;  %s18_s13 = int_to_ptr.vmem [resolvable:$true] %s17_s13  ;;  %s298_s15 = int_to_ptr.vmem [resolvable:$true] %s26_s15 }
   0x4   :  { %s198_s18 = scalar_lea.hbm %s344_s0, 128 }
   0x5   :  { %p199_p0 = scmp.ne.s32.totalorder %s344_s0, %s198_s18  ;;  %p202_p1 = scmp.lt.u32.totalorder %s198_s18, %s344_s0 }
   0x7   :  { %p204_p2 = pnand %p202_p1, %p199_p0 }
   0x9   :  { %207 = shalt.err (!%p204_p2)
}
   0xa   :  { %s208_s23 = scalar_lea.vmem %s18_s13, 128  ;;  %p213_p4 = scmp.lt.s32.totalorder %s18_s13, %s18_s13 }
   0xb   :  { %p209_p3 = scmp.ne.s32.totalorder %s18_s13, %s208_s23  ;;  %p214_p5 = scmp.lt.s32.totalorder %s208_s23, %s208_s23 }
   0xd   :  { %p215_p6 = por %p214_p5, %p213_p4 }
   0xf   :  { %p216_p7 = pnand %p215_p6, %p209_p3 }
  0x11   :  { %219 = shalt.err (!%p216_p7)
}
  0x12   :  { %20 = dma.hbm_to_vmem [thread:$0]  %s344_s0, 128, %s18_s13, [#allocation3]  }
  0x13   :  { %s220_s28 = scalar_lea.hbm %s345_s1, 896 }
  0x14   :  { %p221_p8 = scmp.ne.s32.totalorder %s345_s1, %s220_s28  ;;  %p224_p9 = scmp.lt.u32.totalorder %s220_s28, %s345_s1 }
  0x16   :  { %p226_p10 = pnand %p224_p9, %p221_p8 }
  0x18   :  { %229 = shalt.err (!%p226_p10)
}
  0x19   :  { %s230_s6 = scalar_lea.vmem %s298_s15, 896  ;;  %p235_p12 = scmp.lt.s32.totalorder %s298_s15, %s298_s15 }
  0x1a   :  { %p231_p11 = scmp.ne.s32.totalorder %s298_s15, %s230_s6  ;;  %p236_p13 = scmp.lt.s32.totalorder %s230_s6, %s230_s6 }
  0x1c   :  { %p237_p0 = por %p236_p13, %p235_p12 }
  0x1e   :  { %p238_p1 = pnand %p237_p0, %p231_p11 }
  0x20   :  { %241 = shalt.err (!%p238_p1)
}
  0x21   :  { %s272_s0 = smov 128   ;;  %s273_s7 = smov 8  }
  0x22   :  { %32 = dma.hbm_to_vmem [thread:$0]  %s345_s1, 896, %s298_s15, [#allocation6], %s272_s0, %s272_s0, %s273_s7  }
  0x23   :  { %264 = dma.done.wait [#allocation3], 128  }
  0x24   :  { %265 = vsyncadd [#allocation3], 4294967168 }
  0x25   :  { %266 = dma.done.wait [#allocation6], 896  }
  0x26   :  { %267 = vsyncadd [#allocation6], 4294966400  ;;  %v274_v0 = vmov 0.0|0.0   ;;  %vm275_vm0 = vmmov 0   ;;  %v276_v1 = vmov 0.0   ;;  %v42_v2 = vld [vmem:[#allocation5] sm:$0xff] }
  0x27   :  { %181 = vmatprep.subr.bf16.mxu0 %v274_v0  ;;  %178 = vmatprep.mubr.msk.f32.mxu0 %vm275_vm0, %v276_v1  ;;  %v43_v3 = vld [vmem:[#allocation5 + $0x8] sm:$0xff]  ;;  %v44_v4 = vld [vmem:[#allocation5 + $0x10] sm:$0xff]  ;;  %v45_v6 = vld [vmem:[#allocation5 + $0x18] sm:$0xff]  ;;  %vm60_vm1 = vcmask 1041408   ;;  %vm56_vm2 = vcmask 408576   ;;  %s277_s11 = smov [#allocation7]  }
  0x28   :  { %v182_v5 = vpack.c.bf16 %v43_v3, %v42_v2  ;;  %v185_v7 = vpack.c.bf16 %v45_v6, %v44_v4  ;;  %v46_v8 = vld [vmem:[#allocation5 + $0x20] sm:$0xff]  ;;  %v47_v9 = vld [vmem:[#allocation5 + $0x28] sm:$0xff]  ;;  %v48_v11 = vld [vmem:[#allocation5 + $0x30] sm:$0x3]  ;;  %s143_s12 = sshll.u32 %s277_s11, 4  ;;  %vm135_vm3 = vcmask 834560   ;;  %s144_s12 = int_to_ptr.vmem [resolvable:$true] %s143_s12 }
  0x29   :  { %v188_v10 = vpack.c.bf16 %v47_v9, %v46_v8  ;;  %v41_v12 = vld [vmem:[#allocation2] sm:$0xff]  ;;  %s242_s13 = scalar_lea.vmem %s144_s12, 128  ;;  %p247_p3 = scmp.lt.s32.totalorder %s144_s12, %s144_s12 }
  0x2a   :  { %183 = vmatpush3.bf16.msra.mxu0 %v182_v5  ;;  %v153_v13 = vld [vmem:[%s346_s2] ss:$0 sm:$0xff]  ;;  %p243_p2 = scmp.ne.s32.totalorder %s144_s12, %s242_s13  ;;  %p248_p4 = scmp.lt.s32.totalorder %s242_s13, %s242_s13 }
  0x2b   :  { %184 = vmatprep.subr.bf16.mxu0 %v274_v0 }
  0x2c   :  { %p249_p5 = por %p248_p4, %p247_p3 }
  0x2e   :  { %186 = vmatpush3.bf16.msra.mxu0 %v185_v7  ;;  %p250_p6 = pnand %p249_p5, %p243_p2 }
  0x2f   :  { %187 = vmatprep.subr.bf16.mxu0 %v274_v0 }
  0x32   :  { %189 = vmatpush3.bf16.msra.mxu0 %v188_v10 }
  0x33   :  { %176 = vmatprep.subr.mxu0 %v276_v1 }
  0x36   :  { %177 = vmatpush3.msk.msra.mxu0 %vm60_vm1, %v48_v11 }
  0x37   :  { %179 = vmatmul.mubr.msk.f32.vlgmr.msra.gmra.mrb[0].mxu0 %vm56_vm2, %v41_v12 }
 0x10a   :  { %v130_v14 = vpop.f32.mrb[0].mxu0 }
 0x10b   :  { %v131_v15 = vadd.f32 %v153_v13, %v130_v14  ;;  %v180_v16 = vpop.f32.mrb[1].mxu0 }
 0x10d   :  { %v134_v17 = vmax.f32 %v131_v15, 0.0 }
 0x10f   :  { %136 = vst.msk [vmem:[#allocation7] sm:$0xff] %vm135_vm3, %v134_v17 }
 0x110   :  { %253 = shalt.err (!%p250_p6)
}
 0x111   :  { %s254_s2 = scalar_lea.hbm %s347_s3, 128 }
 0x112   :  { %p255_p7 = scmp.ne.s32.totalorder %s347_s3, %s254_s2  ;;  %p258_p8 = scmp.lt.u32.totalorder %s254_s2, %s347_s3 }
 0x114   :  { %p260_p9 = pnand %p258_p8, %p255_p7 }
 0x116   :  { %263 = shalt.err (!%p260_p9)
}
 0x117   :  { %146 = dma.vmem_to_hbm [thread:$0]  %s144_s12, 128, %s347_s3, [#allocation4]  }
 0x118   :  { %268 = dma.done.wait [#allocation4], 128  }
 0x119   :  { %269 = vsyncadd [#allocation4], 4294967168 }
 0x11a   :  { %150 = vsyncpa [#allocation3], 1 }
 0x11b   :  { %151 = vsyncpa [#allocation6], 1 }
 0x11c   :  { %152 = vsyncpa [#allocation4], 1 }

</bundles_post_ra>
